<compile_context>
chip_gen: v7x
topology: tpu7x:2x2x1
jax: 0.10.0
libtpu: 0.0.40
codegen_flags: <defaults>
</compile_context>

<pallas_src>
import jax
import jax.numpy as jnp
from jax.experimental import pallas as pl
from jax.experimental.pallas import tpu as pltpu

INPUT_SIZE = 2
HIDDEN_SIZE = 32
OUTPUT_SIZE = 1

# Packed-weight row layout (all matmul segments start at 8-aligned sublane rows).
_ROW_W0 = 0                                              # W_ih0^T   (I  rows)
_ROW_WHH0 = ((INPUT_SIZE + 7) // 8) * 8                  # W_hh0^T   (H  rows)
_ROW_WIH1 = _ROW_WHH0 + HIDDEN_SIZE                      # W_ih1^T   (H  rows)
_ROW_WHH1 = _ROW_WIH1 + HIDDEN_SIZE                      # W_hh1^T   (H  rows)
_ROW_B0 = _ROW_WHH1 + HIDDEN_SIZE                        # b_ih0+b_hh0 (1 row)
_ROW_B1 = _ROW_B0 + 1                                    # b_ih1+b_hh1 (1 row)
_ROW_WFC = _ROW_B1 + 1                                   # W_fc row    (1 row)
_PACK_ROWS = ((_ROW_WFC + 1 + 7) // 8) * 8               # pad to multiple of 8


def _pick_time_chunk(T, max_chunk=512):
    """Largest chunk <= max_chunk; chunks < T must be multiples of 8 (out-spec)."""
    if T <= max_chunk:
        return T
    for tc in range(max_chunk, 0, -1):
        if T % tc == 0 and tc % 8 == 0:
            return tc
    return T


def _rnn2_kernel(x_ref, w_ref, bfc_ref, out_ref,
                 h1_ref, h2_ref, u0_ref, h2all_ref):
    """One grid step == one chunk of Tc timesteps. Hidden state persists in VMEM
    scratch across chunks (time axis is 'arbitrary')."""
    Tc, B, I = x_ref.shape
    H = HIDDEN_SIZE

    @pl.when(pl.program_id(0) == 0)
    def _():
        h1_ref[...] = jnp.zeros_like(h1_ref)
        h2_ref[...] = jnp.zeros_like(h2_ref)

    # ---- static views into the packed weights (zero-cost slices) ----
    w0 = w_ref[_ROW_W0:_ROW_W0 + I, :]            # (I, H)  W_ih0^T
    whh0 = w_ref[_ROW_WHH0:_ROW_WHH0 + H, :]      # (H, H)  W_hh0^T
    wih1 = w_ref[_ROW_WIH1:_ROW_WIH1 + H, :]      # (H, H)  W_ih1^T
    whh1 = w_ref[_ROW_WHH1:_ROW_WHH1 + H, :]      # (H, H)  W_hh1^T
    b0 = w_ref[_ROW_B0:_ROW_B0 + 1, :]            # (1, H)  b_ih0 + b_hh0
    b1 = w_ref[_ROW_B1:_ROW_B1 + 1, :]            # (1, H)  b_ih1 + b_hh1
    wfc = w_ref[_ROW_WFC:_ROW_WFC + 1, :]         # (1, H)  W_fc (O == 1)

    # ---- hoisted input projection for the whole chunk (off the serial path).
    # I == 2, so a VPU broadcast-multiply beats a degenerate K=2 MXU GEMM and
    # needs no reshapes. b0 is folded in here once.
    x = x_ref[...]                                              # (Tc, B, I)
    u0 = jnp.broadcast_to(b0[None, :, :], (Tc, B, H))
    for i in range(I):                                          # static unroll
        u0 = u0 + x[:, :, i:i + 1] * w0[i:i + 1, :][None, :, :]
    u0_ref[...] = u0

    # hoisted bias broadcast (JAX does not CSE broadcast_in_dim inside the loop)
    b1_full = jnp.broadcast_to(b1, (B, H))

    # ---- sequential recurrence over the chunk (hidden state carried in vregs) ----
    def step(t, carry):
        h1, h2 = carry
        h1 = jnp.tanh(u0_ref[t] +
                      jnp.dot(h1, whh0, preferred_element_type=jnp.float32))
        h2 = jnp.tanh(jnp.dot(h1, wih1, preferred_element_type=jnp.float32) +
                      jnp.dot(h2, whh1, preferred_element_type=jnp.float32) +
                      b1_full)
        h2all_ref[t] = h2
        return (h1, h2)

    unroll = True if Tc <= 32 else 8
    h1, h2 = jax.lax.fori_loop(0, Tc, step, (h1_ref[...], h2_ref[...]),
                               unroll=unroll)
    h1_ref[...] = h1
    h2_ref[...] = h2

    # ---- deferred FC head: one reduce + one slab store per chunk (O == 1) ----
    y = jnp.sum(h2all_ref[...] * wfc[None, :, :], axis=-1) + bfc_ref[0]   # (Tc, B)
    out_ref[...] = y.astype(out_ref.dtype)


@jax.jit
def rnn2_forward(x, params):
    """x: (B, T, INPUT_SIZE) float32 -> (B, T, OUTPUT_SIZE) float32."""
    B, T, I = x.shape
    H = HIDDEN_SIZE
    assert I == INPUT_SIZE, I

    Tc = _pick_time_chunk(T)
    n_chunks = T // Tc
    f32 = jnp.float32

    # Pack all weights/biases (pre-transposed, biases folded) into one f32 array.
    pack = jnp.zeros((_PACK_ROWS, H), f32)
    pack = pack.at[_ROW_W0:_ROW_W0 + I].set(params["w_ih0"].T.astype(f32))
    pack = pack.at[_ROW_WHH0:_ROW_WHH0 + H].set(params["w_hh0"].T.astype(f32))
    pack = pack.at[_ROW_WIH1:_ROW_WIH1 + H].set(params["w_ih1"].T.astype(f32))
    pack = pack.at[_ROW_WHH1:_ROW_WHH1 + H].set(params["w_hh1"].T.astype(f32))
    pack = pack.at[_ROW_B0].set((params["b_ih0"] + params["b_hh0"]).astype(f32))
    pack = pack.at[_ROW_B1].set((params["b_ih1"] + params["b_hh1"]).astype(f32))
    pack = pack.at[_ROW_WFC].set(params["w_fc"].reshape(H).astype(f32))
    bfc = params["b_fc"].reshape(1).astype(f32)

    x_tm = jnp.transpose(x, (1, 0, 2)).astype(f32)               # (T, B, I)

    # VMEM footprint per chunk: x (Tc*B*I) + u0/h2_all (2*Tc*B*H) + weights
    # (~14 KiB) + out (Tc*B), all f32 — a few hundred KiB even for Tc in the
    # thousands, comfortably under v7x's 64 MiB / default scoped limits.
    out_tb = pl.pallas_call(
        _rnn2_kernel,
        out_shape=jax.ShapeDtypeStruct((T, B), f32),
        grid_spec=pltpu.PrefetchScalarGridSpec(
            num_scalar_prefetch=0,
            grid=(n_chunks,),
            in_specs=[
                pl.BlockSpec((Tc, B, I), lambda c: (c, 0, 0)),      # x chunk
                pl.BlockSpec((_PACK_ROWS, H), lambda c: (0, 0)),    # packed weights
                pl.BlockSpec(memory_space=pltpu.MemorySpace.SMEM),  # b_fc scalar
            ],
            out_specs=pl.BlockSpec((Tc, B), lambda c: (c, 0)),      # y slab
            scratch_shapes=[
                pltpu.VMEM((B, H), f32),        # h1  (layer-0 hidden, persists)
                pltpu.VMEM((B, H), f32),        # h2  (layer-1 hidden, persists)
                pltpu.VMEM((Tc, B, H), f32),    # U0  (hoisted input projection)
                pltpu.VMEM((Tc, B, H), f32),    # h2 history for deferred FC head
            ],
        ),
        compiler_params=pltpu.CompilerParams(
            # Chunk (time) axis carries the recurrence: must run sequentially.
            dimension_semantics=("arbitrary",)),
    )(x_tm, pack, bfc)

    return jnp.transpose(out_tb)[:, :, None]                      # (B, T, 1)


def init_params(key):
    """Deterministic synthetic params matching nn.RNN/nn.Linear shapes."""
    H, I, O = HIDDEN_SIZE, INPUT_SIZE, OUTPUT_SIZE
    ks = jax.random.split(key, 10)
    bound = 1.0 / jnp.sqrt(H)
    u = lambda k, shape: jax.random.uniform(k, shape, jnp.float32, -bound, bound)
    return {
        "w_ih0": u(ks[0], (H, I)),
        "w_hh0": u(ks[1], (H, H)),
        "b_ih0": u(ks[2], (H,)),
        "b_hh0": u(ks[3], (H,)),
        "w_ih1": u(ks[4], (H, H)),
        "w_hh1": u(ks[5], (H, H)),
        "b_ih1": u(ks[6], (H,)),
        "b_hh1": u(ks[7], (H,)),
        "w_fc": u(ks[8], (O, H)),
        "b_fc": u(ks[9], (O,)),
    }


def rnn2_reference(x, params):
    """Pure-JAX reference of the same forward pass (lax.scan over time)."""
    B = x.shape[0]
    h1_0 = jnp.zeros((B, HIDDEN_SIZE), jnp.float32)
    h2_0 = jnp.zeros((B, HIDDEN_SIZE), jnp.float32)

    def step(carry, x_t):
        h1, h2 = carry
        h1 = jnp.tanh(x_t @ params["w_ih0"].T + params["b_ih0"]
                      + h1 @ params["w_hh0"].T + params["b_hh0"])
        h2 = jnp.tanh(h1 @ params["w_ih1"].T + params["b_ih1"]
                      + h2 @ params["w_hh1"].T + params["b_hh1"])
        y = h2 @ params["w_fc"].T + params["b_fc"]
        return (h1, h2), y

    _, ys = jax.lax.scan(step, (h1_0, h2_0), jnp.transpose(x, (1, 0, 2)))
    return jnp.transpose(ys, (1, 0, 2))


if __name__ == "__main__":
    key = jax.random.PRNGKey(0)
    k_param, k_x = jax.random.split(key)

    B, T = 2, 8
    x = jax.random.normal(k_x, (B, T, INPUT_SIZE), jnp.float32)
    params = init_params(k_param)

    out = rnn2_forward(x, params)
    out = jax.block_until_ready(out)

    ref = rnn2_reference(x, params)
    assert out.shape == (B, T, OUTPUT_SIZE), out.shape
    assert jnp.allclose(out, ref, atol=1e-5, rtol=1e-5), \
        f"max abs err {jnp.max(jnp.abs(out - ref))}"

    print("KERNEL_OK")
</pallas_src>

<mosaic_0001>
module attributes {stable_mosaic.version = 11 : i64} {
  func.func @_rnn2_kernel(%arg0: i32, %arg1: memref<8x2x2xf32, #tpu.memory_space<vmem>>, %arg2: memref<112x32xf32, #tpu.memory_space<vmem>>, %arg3: memref<1xf32, #tpu.memory_space<smem>>, %arg4: memref<8x2xf32, #tpu.memory_space<vmem>>, %arg5: memref<2x32xf32, #tpu.memory_space<vmem>>, %arg6: memref<2x32xf32, #tpu.memory_space<vmem>>, %arg7: memref<8x2x32xf32, #tpu.memory_space<vmem>>, %arg8: memref<8x2x32xf32, #tpu.memory_space<vmem>>) attributes {dimension_semantics = [#tpu.dimension_semantics<arbitrary>], iteration_bounds = array<i64: 1>, scalar_prefetch = 0 : i64, scratch_operands = 4 : i64, tpu.core_type = #tpu.core_type<tc>, window_params = [{transform_indices = @transform_0, window_bounds = array<i64: 8, 2, 2>}, {pipeline_mode = #tpu.pipeline_mode<synchronous>, transform_indices = @transform_1, window_bounds = array<i64: 112, 32>}, {transform_indices = @transform_2, window_bounds = array<i64: 1>}, {transform_indices = @transform_3, window_bounds = array<i64: 8, 2>}]} {
    %c0_i32 = arith.constant 0 : i32
    %0 = arith.cmpi eq, %arg0, %c0_i32 : i32
    %1 = arith.extui %0 : i1 to i32
    %c0_i32_0 = arith.constant 0 : i32
    %2 = arith.cmpi ne, %1, %c0_i32_0 : i32
    scf.if %2 {
      %cst_85 = arith.constant 0.000000e+00 : f32
      %164 = vector.broadcast %cst_85 : f32 to vector<2x32xf32>
      %c0_86 = arith.constant 0 : index
      %c0_87 = arith.constant 0 : index
      %165 = vector.load %arg5[%c0_86, %c0_87] : memref<2x32xf32, #tpu.memory_space<vmem>>, vector<2x32xf32>
      tpu.vector_store %arg5[%c0_86, %c0_87], %164 {strides = array<i32>} : memref<2x32xf32, #tpu.memory_space<vmem>>, vector<2x32xf32>,
      %cst_88 = arith.constant 0.000000e+00 : f32
      %166 = vector.broadcast %cst_88 : f32 to vector<2x32xf32>
      %c0_89 = arith.constant 0 : index
      %c0_90 = arith.constant 0 : index
      %167 = vector.load %arg6[%c0_89, %c0_90] : memref<2x32xf32, #tpu.memory_space<vmem>>, vector<2x32xf32>
      tpu.vector_store %arg6[%c0_89, %c0_90], %166 {strides = array<i32>} : memref<2x32xf32, #tpu.memory_space<vmem>>, vector<2x32xf32>,
    } else {
    }
    %c0 = arith.constant 0 : index
    %c0_1 = arith.constant 0 : index
    %3 = vector.load %arg2[%c0, %c0_1] : memref<112x32xf32, #tpu.memory_space<vmem>>, vector<2x32xf32>
    %c8 = arith.constant 8 : index
    %c0_2 = arith.constant 0 : index
    %4 = vector.load %arg2[%c8, %c0_2] : memref<112x32xf32, #tpu.memory_space<vmem>>, vector<32x32xf32>
    %c40 = arith.constant 40 : index
    %c0_3 = arith.constant 0 : index
    %5 = vector.load %arg2[%c40, %c0_3] : memref<112x32xf32, #tpu.memory_space<vmem>>, vector<32x32xf32>
    %c72 = arith.constant 72 : index
    %c0_4 = arith.constant 0 : index
    %6 = vector.load %arg2[%c72, %c0_4] : memref<112x32xf32, #tpu.memory_space<vmem>>, vector<32x32xf32>
    %c104 = arith.constant 104 : index
    %c0_5 = arith.constant 0 : index
    %7 = vector.load %arg2[%c104, %c0_5] : memref<112x32xf32, #tpu.memory_space<vmem>>, vector<1x32xf32>
    %c105 = arith.constant 105 : index
    %c0_6 = arith.constant 0 : index
    %8 = vector.load %arg2[%c105, %c0_6] : memref<112x32xf32, #tpu.memory_space<vmem>>, vector<1x32xf32>
    %c106 = arith.constant 106 : index
    %c0_7 = arith.constant 0 : index
    %9 = vector.load %arg2[%c106, %c0_7] : memref<112x32xf32, #tpu.memory_space<vmem>>, vector<1x32xf32>
    %c0_8 = arith.constant 0 : index
    %c0_9 = arith.constant 0 : index
    %c0_10 = arith.constant 0 : index
    %10 = vector.load %arg1[%c0_8, %c0_9, %c0_10] : memref<8x2x2xf32, #tpu.memory_space<vmem>>, vector<8x2x2xf32>
    %11 = vector.shape_cast %7 : vector<1x32xf32> to vector<1x1x32xf32>
    %12 = vector.shape_cast %11 : vector<1x1x32xf32> to vector<1x1x32xf32>
    %13 = vector.broadcast %12 : vector<1x1x32xf32> to vector<8x2x32xf32>
    %14 = vector.extract_strided_slice %10 {offsets = [0, 0, 0], sizes = [8, 2, 1], strides = [1, 1, 1]} : vector<8x2x2xf32> to vector<8x2x1xf32>
    %15 = vector.extract_strided_slice %3 {offsets = [0, 0], sizes = [1, 32], strides = [1, 1]} : vector<2x32xf32> to vector<1x32xf32>
    %16 = vector.shape_cast %15 : vector<1x32xf32> to vector<1x1x32xf32>
    %17 = vector.broadcast %14 : vector<8x2x1xf32> to vector<8x2x32xf32>
    %18 = vector.broadcast %16 : vector<1x1x32xf32> to vector<8x2x32xf32>
    %19 = arith.mulf %17, %18 : vector<8x2x32xf32>
    %20 = arith.addf %13, %19 : vector<8x2x32xf32>
    %21 = vector.extract_strided_slice %10 {offsets = [0, 0, 1], sizes = [8, 2, 1], strides = [1, 1, 1]} : vector<8x2x2xf32> to vector<8x2x1xf32>
    %22 = vector.extract_strided_slice %3 {offsets = [1, 0], sizes = [1, 32], strides = [1, 1]} : vector<2x32xf32> to vector<1x32xf32>
    %23 = vector.shape_cast %22 : vector<1x32xf32> to vector<1x1x32xf32>
    %24 = vector.broadcast %21 : vector<8x2x1xf32> to vector<8x2x32xf32>
    %25 = vector.broadcast %23 : vector<1x1x32xf32> to vector<8x2x32xf32>
    %26 = arith.mulf %24, %25 : vector<8x2x32xf32>
    %27 = arith.addf %20, %26 : vector<8x2x32xf32>
    %c0_11 = arith.constant 0 : index
    %c0_12 = arith.constant 0 : index
    %c0_13 = arith.constant 0 : index
    %28 = vector.load %arg7[%c0_11, %c0_12, %c0_13] : memref<8x2x32xf32, #tpu.memory_space<vmem>>, vector<8x2x32xf32>
    tpu.vector_store %arg7[%c0_11, %c0_12, %c0_13], %27 {strides = array<i32>} : memref<8x2x32xf32, #tpu.memory_space<vmem>>, vector<8x2x32xf32>,
    %29 = vector.shape_cast %8 : vector<1x32xf32> to vector<1x32xf32>
    %30 = vector.broadcast %29 : vector<1x32xf32> to vector<2x32xf32>
    %c0_14 = arith.constant 0 : index
    %c0_15 = arith.constant 0 : index
    %31 = vector.load %arg5[%c0_14, %c0_15] : memref<2x32xf32, #tpu.memory_space<vmem>>, vector<2x32xf32>
    %c0_16 = arith.constant 0 : index
    %c0_17 = arith.constant 0 : index
    %32 = vector.load %arg6[%c0_16, %c0_17] : memref<2x32xf32, #tpu.memory_space<vmem>>, vector<2x32xf32>
    %c0_i32_18 = arith.constant 0 : i32
    %33 = arith.index_cast %c0_i32_18 : i32 to index
    %c0_19 = arith.constant 0 : index
    %c0_20 = arith.constant 0 : index
    %34 = vector.load %arg7[%33, %c0_19, %c0_20] : memref<8x2x32xf32, #tpu.memory_space<vmem>>, vector<1x2x32xf32>
    %35 = vector.shape_cast %34 : vector<1x2x32xf32> to vector<2x32xf32>
    %cst = arith.constant dense<0.000000e+00> : vector<2x32xf32>
    %36 = tpu.matmul %31, %4, %cst {dimension_numbers = #tpu.dot_dimension_numbers<[1], [0], [0], [1], [0, 0, 1, 1], [], []>} : vector<2x32xf32>, vector<32x32xf32>, vector<2x32xf32> -> vector<2x32xf32>
    %37 = arith.addf %35, %36 : vector<2x32xf32>
    %38 = math.tanh %37 : vector<2x32xf32>
    %cst_21 = arith.constant dense<0.000000e+00> : vector<2x32xf32>
    %39 = tpu.matmul %38, %5, %cst_21 {dimension_numbers = #tpu.dot_dimension_numbers<[1], [0], [0], [1], [0, 0, 1, 1], [], []>} : vector<2x32xf32>, vector<32x32xf32>, vector<2x32xf32> -> vector<2x32xf32>
    %cst_22 = arith.constant dense<0.000000e+00> : vector<2x32xf32>
    %40 = tpu.matmul %32, %6, %cst_22 {dimension_numbers = #tpu.dot_dimension_numbers<[1], [0], [0], [1], [0, 0, 1, 1], [], []>} : vector<2x32xf32>, vector<32x32xf32>, vector<2x32xf32> -> vector<2x32xf32>
    %41 = arith.addf %39, %40 : vector<2x32xf32>
    %42 = arith.addf %41, %30 : vector<2x32xf32>
    %43 = math.tanh %42 : vector<2x32xf32>
    %44 = arith.index_cast %c0_i32_18 : i32 to index
    %c0_23 = arith.constant 0 : index
    %c0_24 = arith.constant 0 : index
    %45 = vector.load %arg8[%44, %c0_23, %c0_24] : memref<8x2x32xf32, #tpu.memory_space<vmem>>, vector<1x2x32xf32>
    %46 = vector.shape_cast %45 : vector<1x2x32xf32> to vector<2x32xf32>
    %47 = vector.shape_cast %43 : vector<2x32xf32> to vector<1x2x32xf32>
    tpu.vector_store %arg8[%44, %c0_23, %c0_24], %47 {strides = array<i32>} : memref<8x2x32xf32, #tpu.memory_space<vmem>>, vector<1x2x32xf32>,
    %c1_i32 = arith.constant 1 : i32
    %48 = arith.index_cast %c1_i32 : i32 to index
    %c0_25 = arith.constant 0 : index
    %c0_26 = arith.constant 0 : index
    %49 = vector.load %arg7[%48, %c0_25, %c0_26] : memref<8x2x32xf32, #tpu.memory_space<vmem>>, vector<1x2x32xf32>
    %50 = vector.shape_cast %49 : vector<1x2x32xf32> to vector<2x32xf32>
    %cst_27 = arith.constant dense<0.000000e+00> : vector<2x32xf32>
    %51 = tpu.matmul %38, %4, %cst_27 {dimension_numbers = #tpu.dot_dimension_numbers<[1], [0], [0], [1], [0, 0, 1, 1], [], []>} : vector<2x32xf32>, vector<32x32xf32>, vector<2x32xf32> -> vector<2x32xf32>
    %52 = arith.addf %50, %51 : vector<2x32xf32>
    %53 = math.tanh %52 : vector<2x32xf32>
    %cst_28 = arith.constant dense<0.000000e+00> : vector<2x32xf32>
    %54 = tpu.matmul %53, %5, %cst_28 {dimension_numbers = #tpu.dot_dimension_numbers<[1], [0], [0], [1], [0, 0, 1, 1], [], []>} : vector<2x32xf32>, vector<32x32xf32>, vector<2x32xf32> -> vector<2x32xf32>
    %cst_29 = arith.constant dense<0.000000e+00> : vector<2x32xf32>
    %55 = tpu.matmul %43, %6, %cst_29 {dimension_numbers = #tpu.dot_dimension_numbers<[1], [0], [0], [1], [0, 0, 1, 1], [], []>} : vector<2x32xf32>, vector<32x32xf32>, vector<2x32xf32> -> vector<2x32xf32>
    %56 = arith.addf %54, %55 : vector<2x32xf32>
    %57 = arith.addf %56, %30 : vector<2x32xf32>
    %58 = math.tanh %57 : vector<2x32xf32>
    %59 = arith.index_cast %c1_i32 : i32 to index
    %c0_30 = arith.constant 0 : index
    %c0_31 = arith.constant 0 : index
    %60 = vector.load %arg8[%59, %c0_30, %c0_31] : memref<8x2x32xf32, #tpu.memory_space<vmem>>, vector<1x2x32xf32>
    %61 = vector.shape_cast %60 : vector<1x2x32xf32> to vector<2x32xf32>
    %62 = vector.shape_cast %58 : vector<2x32xf32> to vector<1x2x32xf32>
    tpu.vector_store %arg8[%59, %c0_30, %c0_31], %62 {strides = array<i32>} : memref<8x2x32xf32, #tpu.memory_space<vmem>>, vector<1x2x32xf32>,
    %c2_i32 = arith.constant 2 : i32
    %63 = arith.index_cast %c2_i32 : i32 to index
    %c0_32 = arith.constant 0 : index
    %c0_33 = arith.constant 0 : index
    %64 = vector.load %arg7[%63, %c0_32, %c0_33] : memref<8x2x32xf32, #tpu.memory_space<vmem>>, vector<1x2x32xf32>
    %65 = vector.shape_cast %64 : vector<1x2x32xf32> to vector<2x32xf32>
    %cst_34 = arith.constant dense<0.000000e+00> : vector<2x32xf32>
    %66 = tpu.matmul %53, %4, %cst_34 {dimension_numbers = #tpu.dot_dimension_numbers<[1], [0], [0], [1], [0, 0, 1, 1], [], []>} : vector<2x32xf32>, vector<32x32xf32>, vector<2x32xf32> -> vector<2x32xf32>
    %67 = arith.addf %65, %66 : vector<2x32xf32>
    %68 = math.tanh %67 : vector<2x32xf32>
    %cst_35 = arith.constant dense<0.000000e+00> : vector<2x32xf32>
    %69 = tpu.matmul %68, %5, %cst_35 {dimension_numbers = #tpu.dot_dimension_numbers<[1], [0], [0], [1], [0, 0, 1, 1], [], []>} : vector<2x32xf32>, vector<32x32xf32>, vector<2x32xf32> -> vector<2x32xf32>
    %cst_36 = arith.constant dense<0.000000e+00> : vector<2x32xf32>
    %70 = tpu.matmul %58, %6, %cst_36 {dimension_numbers = #tpu.dot_dimension_numbers<[1], [0], [0], [1], [0, 0, 1, 1], [], []>} : vector<2x32xf32>, vector<32x32xf32>, vector<2x32xf32> -> vector<2x32xf32>
    %71 = arith.addf %69, %70 : vector<2x32xf32>
    %72 = arith.addf %71, %30 : vector<2x32xf32>
    %73 = math.tanh %72 : vector<2x32xf32>
    %74 = arith.index_cast %c2_i32 : i32 to index
    %c0_37 = arith.constant 0 : index
    %c0_38 = arith.constant 0 : index
    %75 = vector.load %arg8[%74, %c0_37, %c0_38] : memref<8x2x32xf32, #tpu.memory_space<vmem>>, vector<1x2x32xf32>
    %76 = vector.shape_cast %75 : vector<1x2x32xf32> to vector<2x32xf32>
    %77 = vector.shape_cast %73 : vector<2x32xf32> to vector<1x2x32xf32>
    tpu.vector_store %arg8[%74, %c0_37, %c0_38], %77 {strides = array<i32>} : memref<8x2x32xf32, #tpu.memory_space<vmem>>, vector<1x2x32xf32>,
    %c3_i32 = arith.constant 3 : i32
    %78 = arith.index_cast %c3_i32 : i32 to index
    %c0_39 = arith.constant 0 : index
    %c0_40 = arith.constant 0 : index
    %79 = vector.load %arg7[%78, %c0_39, %c0_40] : memref<8x2x32xf32, #tpu.memory_space<vmem>>, vector<1x2x32xf32>
    %80 = vector.shape_cast %79 : vector<1x2x32xf32> to vector<2x32xf32>
    %cst_41 = arith.constant dense<0.000000e+00> : vector<2x32xf32>
    %81 = tpu.matmul %68, %4, %cst_41 {dimension_numbers = #tpu.dot_dimension_numbers<[1], [0], [0], [1], [0, 0, 1, 1], [], []>} : vector<2x32xf32>, vector<32x32xf32>, vector<2x32xf32> -> vector<2x32xf32>
    %82 = arith.addf %80, %81 : vector<2x32xf32>
    %83 = math.tanh %82 : vector<2x32xf32>
    %cst_42 = arith.constant dense<0.000000e+00> : vector<2x32xf32>
    %84 = tpu.matmul %83, %5, %cst_42 {dimension_numbers = #tpu.dot_dimension_numbers<[1], [0], [0], [1], [0, 0, 1, 1], [], []>} : vector<2x32xf32>, vector<32x32xf32>, vector<2x32xf32> -> vector<2x32xf32>
    %cst_43 = arith.constant dense<0.000000e+00> : vector<2x32xf32>
    %85 = tpu.matmul %73, %6, %cst_43 {dimension_numbers = #tpu.dot_dimension_numbers<[1], [0], [0], [1], [0, 0, 1, 1], [], []>} : vector<2x32xf32>, vector<32x32xf32>, vector<2x32xf32> -> vector<2x32xf32>
    %86 = arith.addf %84, %85 : vector<2x32xf32>
    %87 = arith.addf %86, %30 : vector<2x32xf32>
    %88 = math.tanh %87 : vector<2x32xf32>
    %89 = arith.index_cast %c3_i32 : i32 to index
    %c0_44 = arith.constant 0 : index
    %c0_45 = arith.constant 0 : index
    %90 = vector.load %arg8[%89, %c0_44, %c0_45] : memref<8x2x32xf32, #tpu.memory_space<vmem>>, vector<1x2x32xf32>
    %91 = vector.shape_cast %90 : vector<1x2x32xf32> to vector<2x32xf32>
    %92 = vector.shape_cast %88 : vector<2x32xf32> to vector<1x2x32xf32>
    tpu.vector_store %arg8[%89, %c0_44, %c0_45], %92 {strides = array<i32>} : memref<8x2x32xf32, #tpu.memory_space<vmem>>, vector<1x2x32xf32>,
    %c4_i32 = arith.constant 4 : i32
    %93 = arith.index_cast %c4_i32 : i32 to index
    %c0_46 = arith.constant 0 : index
    %c0_47 = arith.constant 0 : index
    %94 = vector.load %arg7[%93, %c0_46, %c0_47] : memref<8x2x32xf32, #tpu.memory_space<vmem>>, vector<1x2x32xf32>
    %95 = vector.shape_cast %94 : vector<1x2x32xf32> to vector<2x32xf32>
    %cst_48 = arith.constant dense<0.000000e+00> : vector<2x32xf32>
    %96 = tpu.matmul %83, %4, %cst_48 {dimension_numbers = #tpu.dot_dimension_numbers<[1], [0], [0], [1], [0, 0, 1, 1], [], []>} : vector<2x32xf32>, vector<32x32xf32>, vector<2x32xf32> -> vector<2x32xf32>
    %97 = arith.addf %95, %96 : vector<2x32xf32>
    %98 = math.tanh %97 : vector<2x32xf32>
    %cst_49 = arith.constant dense<0.000000e+00> : vector<2x32xf32>
    %99 = tpu.matmul %98, %5, %cst_49 {dimension_numbers = #tpu.dot_dimension_numbers<[1], [0], [0], [1], [0, 0, 1, 1], [], []>} : vector<2x32xf32>, vector<32x32xf32>, vector<2x32xf32> -> vector<2x32xf32>
    %cst_50 = arith.constant dense<0.000000e+00> : vector<2x32xf32>
    %100 = tpu.matmul %88, %6, %cst_50 {dimension_numbers = #tpu.dot_dimension_numbers<[1], [0], [0], [1], [0, 0, 1, 1], [], []>} : vector<2x32xf32>, vector<32x32xf32>, vector<2x32xf32> -> vector<2x32xf32>
    %101 = arith.addf %99, %100 : vector<2x32xf32>
    %102 = arith.addf %101, %30 : vector<2x32xf32>
    %103 = math.tanh %102 : vector<2x32xf32>
    %104 = arith.index_cast %c4_i32 : i32 to index
    %c0_51 = arith.constant 0 : index
    %c0_52 = arith.constant 0 : index
    %105 = vector.load %arg8[%104, %c0_51, %c0_52] : memref<8x2x32xf32, #tpu.memory_space<vmem>>, vector<1x2x32xf32>
    %106 = vector.shape_cast %105 : vector<1x2x32xf32> to vector<2x32xf32>
    %107 = vector.shape_cast %103 : vector<2x32xf32> to vector<1x2x32xf32>
    tpu.vector_store %arg8[%104, %c0_51, %c0_52], %107 {strides = array<i32>} : memref<8x2x32xf32, #tpu.memory_space<vmem>>, vector<1x2x32xf32>,
    %c5_i32 = arith.constant 5 : i32
    %108 = arith.index_cast %c5_i32 : i32 to index
    %c0_53 = arith.constant 0 : index
    %c0_54 = arith.constant 0 : index
    %109 = vector.load %arg7[%108, %c0_53, %c0_54] : memref<8x2x32xf32, #tpu.memory_space<vmem>>, vector<1x2x32xf32>
    %110 = vector.shape_cast %109 : vector<1x2x32xf32> to vector<2x32xf32>
    %cst_55 = arith.constant dense<0.000000e+00> : vector<2x32xf32>
    %111 = tpu.matmul %98, %4, %cst_55 {dimension_numbers = #tpu.dot_dimension_numbers<[1], [0], [0], [1], [0, 0, 1, 1], [], []>} : vector<2x32xf32>, vector<32x32xf32>, vector<2x32xf32> -> vector<2x32xf32>
    %112 = arith.addf %110, %111 : vector<2x32xf32>
    %113 = math.tanh %112 : vector<2x32xf32>
    %cst_56 = arith.constant dense<0.000000e+00> : vector<2x32xf32>
    %114 = tpu.matmul %113, %5, %cst_56 {dimension_numbers = #tpu.dot_dimension_numbers<[1], [0], [0], [1], [0, 0, 1, 1], [], []>} : vector<2x32xf32>, vector<32x32xf32>, vector<2x32xf32> -> vector<2x32xf32>
    %cst_57 = arith.constant dense<0.000000e+00> : vector<2x32xf32>
    %115 = tpu.matmul %103, %6, %cst_57 {dimension_numbers = #tpu.dot_dimension_numbers<[1], [0], [0], [1], [0, 0, 1, 1], [], []>} : vector<2x32xf32>, vector<32x32xf32>, vector<2x32xf32> -> vector<2x32xf32>
    %116 = arith.addf %114, %115 : vector<2x32xf32>
    %117 = arith.addf %116, %30 : vector<2x32xf32>
    %118 = math.tanh %117 : vector<2x32xf32>
    %119 = arith.index_cast %c5_i32 : i32 to index
    %c0_58 = arith.constant 0 : index
    %c0_59 = arith.constant 0 : index
    %120 = vector.load %arg8[%119, %c0_58, %c0_59] : memref<8x2x32xf32, #tpu.memory_space<vmem>>, vector<1x2x32xf32>
    %121 = vector.shape_cast %120 : vector<1x2x32xf32> to vector<2x32xf32>
    %122 = vector.shape_cast %118 : vector<2x32xf32> to vector<1x2x32xf32>
    tpu.vector_store %arg8[%119, %c0_58, %c0_59], %122 {strides = array<i32>} : memref<8x2x32xf32, #tpu.memory_space<vmem>>, vector<1x2x32xf32>,
    %c6_i32 = arith.constant 6 : i32
    %123 = arith.index_cast %c6_i32 : i32 to index
    %c0_60 = arith.constant 0 : index
    %c0_61 = arith.constant 0 : index
    %124 = vector.load %arg7[%123, %c0_60, %c0_61] : memref<8x2x32xf32, #tpu.memory_space<vmem>>, vector<1x2x32xf32>
    %125 = vector.shape_cast %124 : vector<1x2x32xf32> to vector<2x32xf32>
    %cst_62 = arith.constant dense<0.000000e+00> : vector<2x32xf32>
    %126 = tpu.matmul %113, %4, %cst_62 {dimension_numbers = #tpu.dot_dimension_numbers<[1], [0], [0], [1], [0, 0, 1, 1], [], []>} : vector<2x32xf32>, vector<32x32xf32>, vector<2x32xf32> -> vector<2x32xf32>
    %127 = arith.addf %125, %126 : vector<2x32xf32>
    %128 = math.tanh %127 : vector<2x32xf32>
    %cst_63 = arith.constant dense<0.000000e+00> : vector<2x32xf32>
    %129 = tpu.matmul %128, %5, %cst_63 {dimension_numbers = #tpu.dot_dimension_numbers<[1], [0], [0], [1], [0, 0, 1, 1], [], []>} : vector<2x32xf32>, vector<32x32xf32>, vector<2x32xf32> -> vector<2x32xf32>
    %cst_64 = arith.constant dense<0.000000e+00> : vector<2x32xf32>
    %130 = tpu.matmul %118, %6, %cst_64 {dimension_numbers = #tpu.dot_dimension_numbers<[1], [0], [0], [1], [0, 0, 1, 1], [], []>} : vector<2x32xf32>, vector<32x32xf32>, vector<2x32xf32> -> vector<2x32xf32>
    %131 = arith.addf %129, %130 : vector<2x32xf32>
    %132 = arith.addf %131, %30 : vector<2x32xf32>
    %133 = math.tanh %132 : vector<2x32xf32>
    %134 = arith.index_cast %c6_i32 : i32 to index
    %c0_65 = arith.constant 0 : index
    %c0_66 = arith.constant 0 : index
    %135 = vector.load %arg8[%134, %c0_65, %c0_66] : memref<8x2x32xf32, #tpu.memory_space<vmem>>, vector<1x2x32xf32>
    %136 = vector.shape_cast %135 : vector<1x2x32xf32> to vector<2x32xf32>
    %137 = vector.shape_cast %133 : vector<2x32xf32> to vector<1x2x32xf32>
    tpu.vector_store %arg8[%134, %c0_65, %c0_66], %137 {strides = array<i32>} : memref<8x2x32xf32, #tpu.memory_space<vmem>>, vector<1x2x32xf32>,
    %c7_i32 = arith.constant 7 : i32
    %138 = arith.index_cast %c7_i32 : i32 to index
    %c0_67 = arith.constant 0 : index
    %c0_68 = arith.constant 0 : index
    %139 = vector.load %arg7[%138, %c0_67, %c0_68] : memref<8x2x32xf32, #tpu.memory_space<vmem>>, vector<1x2x32xf32>
    %140 = vector.shape_cast %139 : vector<1x2x32xf32> to vector<2x32xf32>
    %cst_69 = arith.constant dense<0.000000e+00> : vector<2x32xf32>
    %141 = tpu.matmul %128, %4, %cst_69 {dimension_numbers = #tpu.dot_dimension_numbers<[1], [0], [0], [1], [0, 0, 1, 1], [], []>} : vector<2x32xf32>, vector<32x32xf32>, vector<2x32xf32> -> vector<2x32xf32>
    %142 = arith.addf %140, %141 : vector<2x32xf32>
    %143 = math.tanh %142 : vector<2x32xf32>
    %cst_70 = arith.constant dense<0.000000e+00> : vector<2x32xf32>
    %144 = tpu.matmul %143, %5, %cst_70 {dimension_numbers = #tpu.dot_dimension_numbers<[1], [0], [0], [1], [0, 0, 1, 1], [], []>} : vector<2x32xf32>, vector<32x32xf32>, vector<2x32xf32> -> vector<2x32xf32>
    %cst_71 = arith.constant dense<0.000000e+00> : vector<2x32xf32>
    %145 = tpu.matmul %133, %6, %cst_71 {dimension_numbers = #tpu.dot_dimension_numbers<[1], [0], [0], [1], [0, 0, 1, 1], [], []>} : vector<2x32xf32>, vector<32x32xf32>, vector<2x32xf32> -> vector<2x32xf32>
    %146 = arith.addf %144, %145 : vector<2x32xf32>
    %147 = arith.addf %146, %30 : vector<2x32xf32>
    %148 = math.tanh %147 : vector<2x32xf32>
    %149 = arith.index_cast %c7_i32 : i32 to index
    %c0_72 = arith.constant 0 : index
    %c0_73 = arith.constant 0 : index
    %150 = vector.load %arg8[%149, %c0_72, %c0_73] : memref<8x2x32xf32, #tpu.memory_space<vmem>>, vector<1x2x32xf32>
    %151 = vector.shape_cast %150 : vector<1x2x32xf32> to vector<2x32xf32>
    %152 = vector.shape_cast %148 : vector<2x32xf32> to vector<1x2x32xf32>
    tpu.vector_store %arg8[%149, %c0_72, %c0_73], %152 {strides = array<i32>} : memref<8x2x32xf32, #tpu.memory_space<vmem>>, vector<1x2x32xf32>,
    %c8_i32 = arith.constant 8 : i32
    %c0_74 = arith.constant 0 : index
    %c0_75 = arith.constant 0 : index
    %153 = vector.load %arg5[%c0_74, %c0_75] : memref<2x32xf32, #tpu.memory_space<vmem>>, vector<2x32xf32>
    tpu.vector_store %arg5[%c0_74, %c0_75], %143 {strides = array<i32>} : memref<2x32xf32, #tpu.memory_space<vmem>>, vector<2x32xf32>,
    %c0_76 = arith.constant 0 : index
    %c0_77 = arith.constant 0 : index
    %154 = vector.load %arg6[%c0_76, %c0_77] : memref<2x32xf32, #tpu.memory_space<vmem>>, vector<2x32xf32>
    tpu.vector_store %arg6[%c0_76, %c0_77], %148 {strides = array<i32>} : memref<2x32xf32, #tpu.memory_space<vmem>>, vector<2x32xf32>,
    %c0_78 = arith.constant 0 : index
    %c0_79 = arith.constant 0 : index
    %c0_80 = arith.constant 0 : index
    %155 = vector.load %arg8[%c0_78, %c0_79, %c0_80] : memref<8x2x32xf32, #tpu.memory_space<vmem>>, vector<8x2x32xf32>
    %156 = vector.shape_cast %9 : vector<1x32xf32> to vector<1x1x32xf32>
    %157 = vector.broadcast %156 : vector<1x1x32xf32> to vector<8x2x32xf32>
    %158 = arith.mulf %155, %157 : vector<8x2x32xf32>
    %cst_81 = arith.constant dense<0.000000e+00> : vector<8x2xf32>
    %159 = vector.multi_reduction <add>, %158, %cst_81 [2] : vector<8x2x32xf32> to vector<8x2xf32>
    %c0_82 = arith.constant 0 : index
    %160 = memref.load %arg3[%c0_82] : memref<1xf32, #tpu.memory_space<smem>>
    %161 = vector.broadcast %160 : f32 to vector<8x2xf32>
    %162 = arith.addf %159, %161 : vector<8x2xf32>
    %c0_83 = arith.constant 0 : index
    %c0_84 = arith.constant 0 : index
    %163 = vector.load %arg4[%c0_83, %c0_84] : memref<8x2xf32, #tpu.memory_space<vmem>>, vector<8x2xf32>
    tpu.vector_store %arg4[%c0_83, %c0_84], %162 {strides = array<i32>} : memref<8x2xf32, #tpu.memory_space<vmem>>, vector<8x2xf32>,
    return
  }
  func.func @transform_0(%arg0: i32) -> (i32, i32, i32) {
    %c0_i32 = arith.constant 0 : i32
    %c0_i32_0 = arith.constant 0 : i32
    %c0_i32_1 = arith.constant 0 : i32
    return %arg0, %c0_i32, %c0_i32_0 : i32, i32, i32
  }
  func.func @transform_1(%arg0: i32) -> (i32, i32) {
    %c0_i32 = arith.constant 0 : i32
    %c0_i32_0 = arith.constant 0 : i32
    %c0_i32_1 = arith.constant 0 : i32
    return %c0_i32, %c0_i32_0 : i32, i32
  }
  func.func @transform_2(%arg0: i32) -> i32 {
    %c0_i32 = arith.constant 0 : i32
    %c0_i32_0 = arith.constant 0 : i32
    return %c0_i32 : i32
  }
  func.func @transform_3(%arg0: i32) -> (i32, i32) {
    %c0_i32 = arith.constant 0 : i32
    %c0_i32_0 = arith.constant 0 : i32
    return %arg0, %c0_i32 : i32, i32
  }
}

</mosaic_0001>

<bundles_post_ra>
// kernel: rnn2_forward.1
= control target key start
LH: loop header
LB: loop body
LE: loop exit
PB: predicated region body
PF: predicated region fallthrough
CT: control target
= control target key end

     0   :  { %vm19_vm0 = vcmask 254976   ;;  %v2687_v0 = vmov 0.0|0.0   ;;  %vm2688_vm1 = vmmov 0   ;;  %v2689_v4 = vmov 0.0   ;;  %s3027_s1 = inlined_call_operand.vmem [shape: f32[112,32], index: 1, kind: input, shape index: {}]   ;;  %s3028_s0 = inlined_call_operand.vmem [shape: f32[8,2,2], index: 0, kind: input, shape index: {}]   ;;  %s3029_s2 = inlined_call_operand.<no memory space> [shape: f32[1], index: 2, kind: input, shape index: {}]   ;;  %s3030_s3 = inlined_call_operand.vmem [shape: f32[8,2], index: 3, kind: output, shape index: {}]  }
   0x1   :  { %2501 = vmatprep.subr.bf16.mxu0 %v2687_v0  ;;  %v23_v1 = vld [vmem:[%s3027_s1 + $0x8] sm:$0xff]  ;;  %v24_v2 = vld [vmem:[%s3027_s1 + $0x10] sm:$0xff]  ;;  %v25_v3 = vld [vmem:[%s3027_s1 + $0x18] sm:$0xff]  ;;  %2245 = vmatprep.mubr.msk.f32.mxu0 %vm2688_vm1, %v2689_v4  ;;  %20 = vst.msk [vmem:[#allocation2] sm:$0x3] %vm19_vm0, %v2689_v4  ;;  %v2690_v7 = vmov 0   ;;  %v90_v32 = vlaneseq }
   0x2   :  { %21 = vst.msk [vmem:[#allocation3] sm:$0x3] %vm19_vm0, %v2689_v4  ;;  %v2728_v5 = vpack.c.bf16 %v24_v2, %v23_v1  ;;  %v26_v6 = vld [vmem:[%s3027_s1 + $0x20] sm:$0xff]  ;;  %2652 = vset.pattern.permute.xlu1 %v2690_v7  ;;  %2650 = vset.pattern.permute.xlu0 %v2690_v7  ;;  %v2691_v11 = vmov 1   ;;  %vm178_vm2 = vcmask 261120   ;;  %v31_v19 = vld [vmem:[%s3027_s1 + $0x48] sm:$0xff] }
   0x3   :  { %v39_v8 = vld [vmem:[%s3028_s0 + $0x2] sm:$0x3]  ;;  %v38_v9 = vld [vmem:[%s3028_s0] sm:$0x3]  ;;  %v2740_v10 = vpack.c.bf16 %v26_v6, %v25_v3  ;;  %2507 = vmatprep.subr.bf16.mxu1 %v2687_v0  ;;  %2256 = vmatprep.mubr.msk.f32.mxu1 %vm2688_vm1, %v2689_v4  ;;  %v40_v13 = vld [vmem:[%s3028_s0 + $0x4] sm:$0x3] }
   0x4   :  { %57 = vperm.xlu1 %2652, %v39_v8   ;;  %52 = vperm.xlu0 %2650, %v38_v9   ;;  %v41_v14 = vld [vmem:[%s3028_s0 + $0x6] sm:$0x3]  ;;  %v42_v15 = vld [vmem:[%s3028_s0 + $0x8] sm:$0x3]  ;;  %v43_v16 = vld [vmem:[%s3028_s0 + $0xa] sm:$0x3] }
   0x5   :  { %2503 = vmatpush3.bf16.msra.mxu0 %v2728_v5  ;;  %v44_v17 = vld [vmem:[%s3028_s0 + $0xc] sm:$0x3]  ;;  %v45_v18 = vld [vmem:[%s3028_s0 + $0xe] sm:$0x3]  ;;  %v32_v20 = vld [vmem:[%s3027_s1 + $0x50] sm:$0xff]  ;;  %v2817_v33 = vshrl.u32 %v90_v32, 7 }
   0x6   :  { %2504 = vmatprep.subr.bf16.mxu0 %v2687_v0  ;;  %v2775_v21 = vpack.c.bf16 %v32_v20, %v31_v19  ;;  %v33_v22 = vld [vmem:[%s3027_s1 + $0x58] sm:$0xff]  ;;  %v34_v23 = vld [vmem:[%s3027_s1 + $0x60] sm:$0xff]  ;;  %v27_v26 = vld [vmem:[%s3027_s1 + $0x28] sm:$0xff]  ;;  %vm2069_vm3 = vcmask 1041409   ;;  %vm2071_vm4 = vcmask 1042434   ;;  %vm2073_vm5 = vcmask 1043459  }
   0x7   :  { %v2785_v24 = vpack.c.bf16 %v34_v23, %v33_v22  ;;  %v28_v27 = vld [vmem:[%s3027_s1 + $0x30] sm:$0xff]  ;;  %v29_v29 = vld [vmem:[%s3027_s1 + $0x38] sm:$0xff]  ;;  %v30_v30 = vld [vmem:[%s3027_s1 + $0x40] sm:$0xff]  ;;  %v92_v34 = vsub.s32 0, %v2817_v33  ;;  %v144_v37 = vsub.s32 1, %v2817_v33  ;;  %vm2075_vm6 = vcmask 1044484  }
   0x8   :  { %2653 = vset.pattern.permute.xlu1 %v2691_v11  ;;  %2651 = vset.pattern.permute.xlu0 %v2691_v11  ;;  %v175_v12 = vld [vmem:[#allocation2] sm:$0x3]  ;;  %v2795_v28 = vpack.c.bf16 %v28_v27, %v27_v26  ;;  %v2805_v31 = vpack.c.bf16 %v30_v30, %v29_v29  ;;  %v2090_v42 = vld [vmem:[%s3027_s1 + $0x68] ss:$0 sm:$0xff]  ;;  %vm2077_vm7 = vcmask 1045509   ;;  %vm2079_vm8 = vcmask 1046534  }
   0x9   :  { %2506 = vmatpush3.bf16.msra.mxu0 %v2740_v10  ;;  %115 = vperm.xlu1 %2653, %v39_v8   ;;  %v176_v25 = vld [vmem:[#allocation3] sm:$0x3]  ;;  %v22_v35 = vld [vmem:[%s3027_s1] sm:$0x3]  ;;  %vm2081_vm9 = vcmask 1047559   ;;  %vm2084_vm10 = vcmask 15360  }
   0xa   :  { %111 = vperm.xlu0 %2651, %v38_v9   ;;  %2513 = vmatprep.subr.bf16.mxu0 %v2687_v0  ;;  %v93_v36 = vrot.slane %v22_v35, %v92_v34  ;;  %v145_v43 = vrot.slane %v22_v35, %v144_v37 }
   0xb   :  { %2509 = vmatpush3.bf16.msra.mxu1 %v2775_v21 }
   0xc   :  { %2246 = vmatmul.mubr.msk.f32.vlgmr.msra.gmra.mrb[0].mxu0 %vm178_vm2, %v175_v12  ;;  %2510 = vmatprep.subr.bf16.mxu1 %v2687_v0 }
   0xd   :  { %2654 = vset.pattern.permute.xlu1 %v2690_v7  ;;  %2267 = vmatprep.mubr.msk.f32.mxu0 %vm2688_vm1, %v2689_v4 }
   0xe   :  { %62 = vperm.xlu1 %2654, %v40_v13   ;;  %119 = vperm.xlu0 %2651, %v40_v13  }
   0xf   :  { %2512 = vmatpush3.bf16.msra.mxu1 %v2785_v24  ;;  %2515 = vmatpush3.bf16.msra.mxu0 %v2795_v28 }
  0x10   :  { %2519 = vmatprep.subr.bf16.mxu1 %v2687_v0  ;;  %2516 = vmatprep.subr.bf16.mxu0 %v2687_v0 }
  0x12   :  { %67 = vperm.xlu1 %2654, %v41_v14   ;;  %123 = vperm.xlu0 %2651, %v41_v14  }
  0x13   :  { %2257 = vmatmul.mubr.msk.f32.vlgmr.msra.gmra.mrb[0].mxu1 %vm178_vm2, %v176_v25  ;;  %2518 = vmatpush3.bf16.msra.mxu0 %v2805_v31 }
  0x14   :  { %2521 = vmatpush3.bf16.msra.mxu1 %v2728_v5  ;;  %2278 = vmatprep.mubr.msk.f32.mxu1 %vm2688_vm1, %v2689_v4 }
  0x15   :  { %2522 = vmatprep.subr.bf16.mxu1 %v2687_v0  ;;  %2525 = vmatprep.subr.bf16.mxu0 %v2687_v0 }
  0x16   :  { %72 = vperm.xlu1 %2654, %v42_v15   ;;  %127 = vperm.xlu0 %2651, %v42_v15  }
  0x18   :  { %2524 = vmatpush3.bf16.msra.mxu1 %v2740_v10 }
  0x19   :  { %2531 = vmatprep.subr.bf16.mxu1 %v2687_v0 }
  0x1a   :  { %77 = vperm.xlu1 %2654, %v43_v16   ;;  %131 = vperm.xlu0 %2651, %v43_v16  }
  0x1e   :  { %82 = vperm.xlu1 %2654, %v44_v17   ;;  %135 = vperm.xlu0 %2651, %v44_v17  }
  0x22   :  { %87 = vperm.xlu1 %2654, %v45_v18   ;;  %139 = vperm.xlu0 %2651, %v45_v18  }
  0x83   :  { %v58_v38 = vpop.permute.xlu1 %57  ;;  %v53_v39 = vpop.permute.xlu0 %52 }
  0x84   :  { %v95_v40 = vmul.f32 %v93_v36, %v58_v38  ;;  %v94_v41 = vmul.f32 %v93_v36, %v53_v39 }
  0x86   :  { %v103_v44 = vadd.f32 %v2090_v42, %v95_v40  ;;  %v102_v45 = vadd.f32 %v2090_v42, %v94_v41 }
  0x88   :  { %v116_v46 = vpop.permute.xlu1 %115 }
  0x89   :  { %v147_v47 = vmul.f32 %v145_v43, %v116_v46  ;;  %v112_v48 = vpop.permute.xlu0 %111 }
  0x8a   :  { %v146_v49 = vmul.f32 %v145_v43, %v112_v48 }
  0x8b   :  { %v155_v50 = vadd.f32 %v147_v47, %v103_v44 }
  0x8c   :  { %v154_v51 = vadd.f32 %v146_v49, %v102_v45 }
  0x8d   :  { %164 = vst.msk [vmem:[#allocation4 + $0x2] sm:$0x3] %vm19_vm0, %v155_v50  ;;  %v63_v52 = vpop.permute.xlu1 %62  ;;  %v120_v53 = vpop.permute.xlu0 %119 }
  0x8e   :  { %163 = vst.msk [vmem:[#allocation4] sm:$0x3] %vm19_vm0, %v154_v51  ;;  %v96_v54 = vmul.f32 %v93_v36, %v63_v52  ;;  %v148_v55 = vmul.f32 %v145_v43, %v120_v53  ;;  %v2872_v52 = vld [vmem:[%s3027_s1 + $0x6a] ss:$0 sm:$0xff] }
  0x90   :  { %v104_v56 = vadd.f32 %v2090_v42, %v96_v54 }
  0x91   :  { %v68_v57 = vpop.permute.xlu1 %67  ;;  %v124_v58 = vpop.permute.xlu0 %123 }
  0x92   :  { %v156_v59 = vadd.f32 %v148_v55, %v104_v56  ;;  %v97_v60 = vmul.f32 %v93_v36, %v68_v57  ;;  %v149_v61 = vmul.f32 %v145_v43, %v124_v58 }
  0x94   :  { %165 = vst.msk [vmem:[#allocation4 + $0x4] sm:$0x3] %vm19_vm0, %v156_v59  ;;  %v105_v62 = vadd.f32 %v2090_v42, %v97_v60  ;;  %v404_v41 = vld [vmem:[#allocation4 + $0x2] sm:$0x3] }
  0x95   :  { %v73_v63 = vpop.permute.xlu1 %72  ;;  %v128_v1 = vpop.permute.xlu0 %127  ;;  %v177_v34 = vld [vmem:[#allocation4] sm:$0x3] }
  0x96   :  { %v157_v2 = vadd.f32 %v149_v61, %v105_v62  ;;  %v98_v3 = vmul.f32 %v93_v36, %v73_v63  ;;  %v150_v6 = vmul.f32 %v145_v43, %v128_v1 }
  0x98   :  { %166 = vst.msk [vmem:[#allocation4 + $0x6] sm:$0x3] %vm19_vm0, %v157_v2  ;;  %v106_v7 = vadd.f32 %v2090_v42, %v98_v3 }
  0x99   :  { %v78_v8 = vpop.permute.xlu1 %77  ;;  %v132_v9 = vpop.permute.xlu0 %131 }
  0x9a   :  { %v158_v11 = vadd.f32 %v150_v6, %v106_v7  ;;  %v99_v12 = vmul.f32 %v93_v36, %v78_v8  ;;  %v151_v13 = vmul.f32 %v145_v43, %v132_v9 }
  0x9b   :  { %v628_v62 = vld [vmem:[#allocation4 + $0x4] sm:$0x3] }
  0x9c   :  { %167 = vst.msk [vmem:[#allocation4 + $0x8] sm:$0x3] %vm19_vm0, %v158_v11  ;;  %v107_v14 = vadd.f32 %v2090_v42, %v99_v12 }
  0x9d   :  { %v83_v15 = vpop.permute.xlu1 %82  ;;  %v136_v16 = vpop.permute.xlu0 %135 }
  0x9e   :  { %v159_v17 = vadd.f32 %v151_v13, %v107_v14  ;;  %v100_v18 = vmul.f32 %v93_v36, %v83_v15  ;;  %v152_v19 = vmul.f32 %v145_v43, %v136_v16 }
  0x9f   :  { %v852_v16 = vld [vmem:[#allocation4 + $0x6] sm:$0x3] }
  0xa0   :  { %168 = vst.msk [vmem:[#allocation4 + $0xa] sm:$0x3] %vm19_vm0, %v159_v17  ;;  %v108_v20 = vadd.f32 %v2090_v42, %v100_v18 }
  0xa1   :  { %v88_v22 = vpop.permute.xlu1 %87  ;;  %v140_v23 = vpop.permute.xlu0 %139 }
  0xa2   :  { %v160_v25 = vadd.f32 %v152_v19, %v108_v20  ;;  %v101_v26 = vmul.f32 %v93_v36, %v88_v22  ;;  %v153_v27 = vmul.f32 %v145_v43, %v140_v23 }
  0xa4   :  { %169 = vst.msk [vmem:[#allocation4 + $0xc] sm:$0x3] %vm19_vm0, %v160_v25  ;;  %v109_v29 = vadd.f32 %v2090_v42, %v101_v26  ;;  %v2852_v42 = vld [vmem:[%s3027_s1 + $0x69] ss:$0 sm:$0xff] }
  0xa6   :  { %v161_v30 = vadd.f32 %v153_v27, %v109_v29 }
  0xa8   :  { %170 = vst.msk [vmem:[#allocation4 + $0xe] sm:$0x3] %vm19_vm0, %v161_v30 }
  0xdf   :  { %v248_v35 = vpop.f32.mrb[0].mxu0 }
  0xe0   :  { %v252_v37 = vadd.f32 %v248_v35, %v177_v34  ;;  %v2247_v38 = vpop.f32.mrb[1].mxu0 }
  0xe2   :  { %2655 = vtanh.f32 %v252_v37 }
  0xe6   :  { %v323_v36 = vpop.f32.mrb[0].mxu1 }
  0xe7   :  { %v2258_v40 = vpop.f32.mrb[1].mxu1 }
  0xec   :  { %v2656_v39 = vpop.eup %2655 }
  0xed   :  { %2268 = vmatmul.mubr.msk.f32.vlgmr.msra.gmra.mrb[2].mxu0 %vm178_vm2, %v2656_v39  ;;  %2279 = vmatmul.mubr.msk.f32.vlgmr.msra.gmra.mrb[2].mxu1 %vm178_vm2, %v2656_v39  ;;  %v1076_v39 = vld [vmem:[#allocation4 + $0x8] sm:$0x3] }
  0xee   :  { %2533 = vmatpush3.bf16.msra.mxu1 %v2795_v28  ;;  %2527 = vmatpush3.bf16.msra.mxu0 %v2775_v21 }
  0xef   :  { %2534 = vmatprep.subr.bf16.mxu1 %v2687_v0  ;;  %2528 = vmatprep.subr.bf16.mxu0 %v2687_v0 }
  0xf0   :  { %2300 = vmatprep.mubr.msk.f32.mxu1 %vm2688_vm1, %v2689_v4  ;;  %2289 = vmatprep.mubr.msk.f32.mxu0 %vm2688_vm1, %v2689_v4 }
  0xf2   :  { %2536 = vmatpush3.bf16.msra.mxu1 %v2805_v31  ;;  %2530 = vmatpush3.bf16.msra.mxu0 %v2785_v24 }
  0xf3   :  { %2537 = vmatprep.subr.bf16.mxu0 %v2687_v0  ;;  %2543 = vmatprep.subr.bf16.mxu1 %v2687_v0 }
 0x1c0   :  { %v396_v43 = vpop.f32.mrb[2].mxu0  ;;  %v471_v44 = vpop.f32.mrb[2].mxu1 }
 0x1c1   :  { %v397_v45 = vadd.f32 %v396_v43, %v323_v36  ;;  %v475_v46 = vadd.f32 %v471_v44, %v404_v41  ;;  %v2269_v47 = vpop.f32.mrb[3].mxu0  ;;  %v2280_v48 = vpop.f32.mrb[3].mxu1 }
 0x1c3   :  { %v400_v49 = vadd.f32 %v2852_v42, %v397_v45  ;;  %2657 = vtanh.f32 %v475_v46 }
 0x1c5   :  { %2659 = vtanh.f32 %v400_v49 }
 0x1cd   :  { %v2658_v50 = vpop.eup %2657 }
 0x1ce   :  { %2301 = vmatmul.mubr.msk.f32.vlgmr.msra.gmra.mrb[4].mxu1 %vm178_vm2, %v2658_v50 }
 0x1cf   :  { %v2660_v51 = vpop.eup %2659  ;;  %2545 = vmatpush3.bf16.msra.mxu1 %v2775_v21  ;;  %2322 = vmatprep.mubr.msk.f32.mxu1 %vm2688_vm1, %v2689_v4 }
 0x1d0   :  { %402 = vst.msk [vmem:[#allocation5] sm:$0x3] %vm19_vm0, %v2660_v51  ;;  %2290 = vmatmul.mubr.msk.f32.vlgmr.msra.gmra.mrb[4].mxu0 %vm178_vm2, %v2660_v51  ;;  %2546 = vmatprep.subr.bf16.mxu1 %v2687_v0 }
 0x1d1   :  { %2539 = vmatpush3.bf16.msra.mxu0 %v2728_v5  ;;  %2311 = vmatprep.mubr.msk.f32.mxu0 %vm2688_vm1, %v2689_v4 }
 0x1d2   :  { %2540 = vmatprep.subr.bf16.mxu0 %v2687_v0 }
 0x1d3   :  { %2548 = vmatpush3.bf16.msra.mxu1 %v2785_v24 }
 0x1d4   :  { %2555 = vmatprep.subr.bf16.mxu1 %v2687_v0 }
 0x1d5   :  { %2542 = vmatpush3.bf16.msra.mxu0 %v2740_v10 }
 0x1d6   :  { %2549 = vmatprep.subr.bf16.mxu0 %v2687_v0 }
 0x1d7   :  { %v1973_v53 = vld [vmem:[#allocation5] sm:$0x3] }
 0x1d8   :  { %2312 = vmatmul.mubr.msk.f32.vlgmr.msra.gmra.mrb[6].mxu0 %vm178_vm2, %v2658_v50  ;;  %v1985_v54 = vmul.f32 %v2872_v52, %v1973_v53 }
 0x1d9   :  { %2551 = vmatpush3.bf16.msra.mxu0 %v2795_v28  ;;  %2333 = vmatprep.mubr.msk.f32.mxu0 %vm2688_vm1, %v2689_v4 }
 0x1da   :  { %v1993_v55 = vsel %vm19_vm0, %v1985_v54, 0.0  ;;  %2552 = vmatprep.subr.bf16.mxu0 %v2687_v0 }
 0x1db   :  { %1994 = vadd.xlane.f32.xlu1 %v1993_v55  ;;  %v1300_v55 = vld [vmem:[#allocation4 + $0xa] sm:$0x3] }
 0x1dd   :  { %2554 = vmatpush3.bf16.msra.mxu0 %v2805_v31 }
 0x1de   :  { %2561 = vmatprep.subr.bf16.mxu0 %v2687_v0 }
 0x2a1   :  { %v619_v56 = vpop.f32.mrb[4].mxu1 }
 0x2a2   :  { %v2302_v57 = vpop.f32.mrb[5].mxu1 }
 0x2a3   :  { %v546_v58 = vpop.f32.mrb[4].mxu0 }
 0x2a4   :  { %v620_v59 = vadd.f32 %v619_v56, %v546_v58  ;;  %v2291_v60 = vpop.f32.mrb[5].mxu0 }
 0x2a6   :  { %v623_v61 = vadd.f32 %v2852_v42, %v620_v59 }
 0x2a8   :  { %2661 = vtanh.f32 %v623_v61 }
 0x2ab   :  { %v695_v63 = vpop.f32.mrb[6].mxu0 }
 0x2ac   :  { %v699_v1 = vadd.f32 %v695_v63, %v628_v62  ;;  %v2313_v2 = vpop.f32.mrb[7].mxu0 }
 0x2ae   :  { %2663 = vtanh.f32 %v699_v1 }
 0x2b2   :  { %v2662_v3 = vpop.eup %2661 }
 0x2b3   :  { %626 = vst.msk [vmem:[#allocation5 + $0x2] sm:$0x3] %vm19_vm0, %v2662_v3  ;;  %2323 = vmatmul.mubr.msk.f32.vlgmr.msra.gmra.mrb[6].mxu1 %vm178_vm2, %v2662_v3 }
 0x2b4   :  { %2557 = vmatpush3.bf16.msra.mxu1 %v2728_v5  ;;  %2344 = vmatprep.mubr.msk.f32.mxu1 %vm2688_vm1, %v2689_v4 }
 0x2b5   :  { %2558 = vmatprep.subr.bf16.mxu1 %v2687_v0 }
 0x2b8   :  { %v2664_v6 = vpop.eup %2663  ;;  %2560 = vmatpush3.bf16.msra.mxu1 %v2740_v10 }
 0x2b9   :  { %2334 = vmatmul.mubr.msk.f32.vlgmr.msra.gmra.mrb[8].mxu0 %vm178_vm2, %v2664_v6  ;;  %2567 = vmatprep.subr.bf16.mxu1 %v2687_v0 }
 0x2ba   :  { %v1974_v7 = vld [vmem:[#allocation5 + $0x2] sm:$0x3]  ;;  %2563 = vmatpush3.bf16.msra.mxu0 %v2775_v21  ;;  %2355 = vmatprep.mubr.msk.f32.mxu0 %vm2688_vm1, %v2689_v4 }
 0x2bb   :  { %2345 = vmatmul.mubr.msk.f32.vlgmr.msra.gmra.mrb[8].mxu1 %vm178_vm2, %v2664_v6  ;;  %v1986_v8 = vmul.f32 %v2872_v52, %v1974_v7  ;;  %2564 = vmatprep.subr.bf16.mxu0 %v2687_v0 }
 0x2bc   :  { %2569 = vmatpush3.bf16.msra.mxu1 %v2795_v28  ;;  %2366 = vmatprep.mubr.msk.f32.mxu1 %vm2688_vm1, %v2689_v4 }
 0x2bd   :  { %v1996_v9 = vsel %vm19_vm0, %v1986_v8, 0.0  ;;  %2570 = vmatprep.subr.bf16.mxu1 %v2687_v0 }
 0x2be   :  { %1997 = vadd.xlane.f32.xlu0 %v1996_v9  ;;  %2566 = vmatpush3.bf16.msra.mxu0 %v2785_v24  ;;  %v1524_v9 = vld [vmem:[#allocation4 + $0xc] sm:$0x3] }
 0x2bf   :  { %2573 = vmatprep.subr.bf16.mxu0 %v2687_v0 }
 0x2c0   :  { %2572 = vmatpush3.bf16.msra.mxu1 %v2805_v31 }
 0x2c1   :  { %2579 = vmatprep.subr.bf16.mxu1 %v2687_v0 }
 0x386   :  { %v770_v11 = vpop.f32.mrb[6].mxu1 }
 0x387   :  { %v2324_v12 = vpop.f32.mrb[7].mxu1 }
 0x38c   :  { %v843_v13 = vpop.f32.mrb[8].mxu0 }
 0x38d   :  { %v844_v14 = vadd.f32 %v843_v13, %v770_v11  ;;  %v2335_v15 = vpop.f32.mrb[9].mxu0 }
 0x38e   :  { %v919_v17 = vpop.f32.mrb[8].mxu1 }
 0x38f   :  { %v847_v18 = vadd.f32 %v2852_v42, %v844_v14  ;;  %v923_v19 = vadd.f32 %v919_v17, %v852_v16  ;;  %v2346_v20 = vpop.f32.mrb[9].mxu1 }
 0x391   :  { %2665 = vtanh.f32 %v847_v18 }
 0x392   :  { %2667 = vtanh.f32 %v923_v19 }
 0x39b   :  { %v2666_v22 = vpop.eup %2665 }
 0x39c   :  { %v2668_v23 = vpop.eup %2667  ;;  %850 = vst.msk [vmem:[#allocation5 + $0x4] sm:$0x3] %vm19_vm0, %v2666_v22  ;;  %2356 = vmatmul.mubr.msk.f32.vlgmr.msra.gmra.mrb[10].mxu0 %vm178_vm2, %v2666_v22 }
 0x39d   :  { %2367 = vmatmul.mubr.msk.f32.vlgmr.msra.gmra.mrb[10].mxu1 %vm178_vm2, %v2668_v23  ;;  %2575 = vmatpush3.bf16.msra.mxu0 %v2728_v5 }
 0x39e   :  { %2576 = vmatprep.subr.bf16.mxu0 %v2687_v0  ;;  %2377 = vmatprep.mubr.msk.f32.mxu0 %vm2688_vm1, %v2689_v4 }
 0x39f   :  { %2581 = vmatpush3.bf16.msra.mxu1 %v2775_v21  ;;  %2388 = vmatprep.mubr.msk.f32.mxu1 %vm2688_vm1, %v2689_v4 }
 0x3a0   :  { %2582 = vmatprep.subr.bf16.mxu1 %v2687_v0 }
 0x3a1   :  { %2578 = vmatpush3.bf16.msra.mxu0 %v2740_v10 }
 0x3a2   :  { %2585 = vmatprep.subr.bf16.mxu0 %v2687_v0 }
 0x3a3   :  { %v1975_v25 = vld [vmem:[#allocation5 + $0x4] sm:$0x3]  ;;  %2584 = vmatpush3.bf16.msra.mxu1 %v2785_v24 }
 0x3a4   :  { %2378 = vmatmul.mubr.msk.f32.vlgmr.msra.gmra.mrb[12].mxu0 %vm178_vm2, %v2668_v23  ;;  %v1987_v26 = vmul.f32 %v2872_v52, %v1975_v25  ;;  %2591 = vmatprep.subr.bf16.mxu1 %v2687_v0 }
 0x3a5   :  { %2587 = vmatpush3.bf16.msra.mxu0 %v2795_v28  ;;  %2399 = vmatprep.mubr.msk.f32.mxu0 %vm2688_vm1, %v2689_v4 }
 0x3a6   :  { %v1999_v27 = vsel %vm19_vm0, %v1987_v26, 0.0  ;;  %2588 = vmatprep.subr.bf16.mxu0 %v2687_v0 }
 0x3a7   :  { %2000 = vadd.xlane.f32.xlu0 %v1999_v27 }
 0x3a9   :  { %2590 = vmatpush3.bf16.msra.mxu0 %v2805_v31 }
 0x3aa   :  { %2597 = vmatprep.subr.bf16.mxu0 %v2687_v0 }
 0x46f   :  { %v994_v29 = vpop.f32.mrb[10].mxu0 }
 0x470   :  { %v1067_v30 = vpop.f32.mrb[10].mxu1  ;;  %v2357_v34 = vpop.f32.mrb[11].mxu0 }
 0x471   :  { %v1068_v35 = vadd.f32 %v1067_v30, %v994_v29  ;;  %v2368_v37 = vpop.f32.mrb[11].mxu1 }
 0x473   :  { %v1071_v38 = vadd.f32 %v2852_v42, %v1068_v35 }
 0x475   :  { %2669 = vtanh.f32 %v1071_v38 }
 0x477   :  { %v1143_v36 = vpop.f32.mrb[12].mxu0 }
 0x478   :  { %v1147_v40 = vadd.f32 %v1143_v36, %v1076_v39  ;;  %v2379_v41 = vpop.f32.mrb[13].mxu0 }
 0x47a   :  { %2671 = vtanh.f32 %v1147_v40 }
 0x47f   :  { %v2670_v43 = vpop.eup %2669 }
 0x480   :  { %1074 = vst.msk [vmem:[#allocation5 + $0x6] sm:$0x3] %vm19_vm0, %v2670_v43  ;;  %2389 = vmatmul.mubr.msk.f32.vlgmr.msra.gmra.mrb[12].mxu1 %vm178_vm2, %v2670_v43  ;;  %v1998_v43 = vpop.xlane.xlu0 %1997 }
 0x481   :  { %2593 = vmatpush3.bf16.msra.mxu1 %v2728_v5  ;;  %2410 = vmatprep.mubr.msk.f32.mxu1 %vm2688_vm1, %v2689_v4 }
 0x482   :  { %2594 = vmatprep.subr.bf16.mxu1 %v2687_v0 }
 0x484   :  { %v2672_v44 = vpop.eup %2671 }
 0x485   :  { %2596 = vmatpush3.bf16.msra.mxu1 %v2740_v10  ;;  %2400 = vmatmul.mubr.msk.f32.vlgmr.msra.gmra.mrb[14].mxu0 %vm178_vm2, %v2672_v44 }
 0x486   :  { %2599 = vmatpush3.bf16.msra.mxu0 %v2775_v21  ;;  %2603 = vmatprep.subr.bf16.mxu1 %v2687_v0 }
 0x487   :  { %v1976_v45 = vld [vmem:[#allocation5 + $0x6] sm:$0x3]  ;;  %2600 = vmatprep.subr.bf16.mxu0 %v2687_v0  ;;  %2421 = vmatprep.mubr.msk.f32.mxu0 %vm2688_vm1, %v2689_v4 }
 0x488   :  { %2411 = vmatmul.mubr.msk.f32.vlgmr.msra.gmra.mrb[14].mxu1 %vm178_vm2, %v2672_v44  ;;  %v1988_v46 = vmul.f32 %v2872_v52, %v1976_v45  ;;  %v1995_v44 = vpop.xlane.xlu1 %1994  ;;  %v2001_v45 = vpop.xlane.xlu0 %2000 }
 0x489   :  { %2605 = vmatpush3.bf16.msra.mxu1 %v2795_v28  ;;  %2432 = vmatprep.mubr.msk.f32.mxu1 %vm2688_vm1, %v2689_v4 }
 0x48a   :  { %v2002_v47 = vsel %vm19_vm0, %v1988_v46, 0.0  ;;  %2602 = vmatpush3.bf16.msra.mxu0 %v2785_v24  ;;  %2606 = vmatprep.subr.bf16.mxu1 %v2687_v0 }
 0x48b   :  { %2003 = vadd.xlane.f32.xlu1 %v2002_v47  ;;  %2609 = vmatprep.subr.bf16.mxu0 %v2687_v0  ;;  %v2036_v47 = vand.u32 127, %v90_v32 }
 0x48d   :  { %2608 = vmatpush3.bf16.msra.mxu1 %v2805_v31 }
 0x48e   :  { %2615 = vmatprep.subr.bf16.mxu1 %v2687_v0 }
 0x518   :  { %v2004_v46 = vpop.xlane.xlu1 %2003 }
 0x553   :  { %v1218_v48 = vpop.f32.mrb[12].mxu1 }
 0x554   :  { %v2390_v49 = vpop.f32.mrb[13].mxu1 }
 0x558   :  { %v1291_v50 = vpop.f32.mrb[14].mxu0 }
 0x559   :  { %v1292_v51 = vadd.f32 %v1291_v50, %v1218_v48  ;;  %v2401_v53 = vpop.f32.mrb[15].mxu0 }
 0x55a   :  { %v2039_v53 = vsub.s32 %v2036_v47, %v2817_v33 }
 0x55b   :  { %v1295_v54 = vadd.f32 %v2852_v42, %v1292_v51  ;;  %v1367_v56 = vpop.f32.mrb[14].mxu1 }
 0x55c   :  { %v1371_v57 = vadd.f32 %v1367_v56, %v1300_v55  ;;  %v2412_v58 = vpop.f32.mrb[15].mxu1 }
 0x55d   :  { %2673 = vtanh.f32 %v1295_v54 }
 0x55e   :  { %2675 = vtanh.f32 %v1371_v57 }
 0x567   :  { %v2674_v59 = vpop.eup %2673 }
 0x568   :  { %v2676_v60 = vpop.eup %2675  ;;  %1298 = vst.msk [vmem:[#allocation5 + $0x8] sm:$0x3] %vm19_vm0, %v2674_v59  ;;  %2422 = vmatmul.mubr.msk.f32.vlgmr.msra.gmra.mrb[16].mxu0 %vm178_vm2, %v2674_v59 }
 0x569   :  { %2433 = vmatmul.mubr.msk.f32.vlgmr.msra.gmra.mrb[16].mxu1 %vm178_vm2, %v2676_v60  ;;  %2611 = vmatpush3.bf16.msra.mxu0 %v2728_v5 }
 0x56a   :  { %2612 = vmatprep.subr.bf16.mxu0 %v2687_v0  ;;  %2443 = vmatprep.mubr.msk.f32.mxu0 %vm2688_vm1, %v2689_v4 }
 0x56b   :  { %2617 = vmatpush3.bf16.msra.mxu1 %v2775_v21  ;;  %2454 = vmatprep.mubr.msk.f32.mxu1 %vm2688_vm1, %v2689_v4 }
 0x56c   :  { %2618 = vmatprep.subr.bf16.mxu1 %v2687_v0 }
 0x56d   :  { %2614 = vmatpush3.bf16.msra.mxu0 %v2740_v10 }
 0x56e   :  { %2621 = vmatprep.subr.bf16.mxu0 %v2687_v0 }
 0x56f   :  { %v1977_v61 = vld [vmem:[#allocation5 + $0x8] sm:$0x3]  ;;  %2620 = vmatpush3.bf16.msra.mxu1 %v2785_v24 }
 0x570   :  { %2444 = vmatmul.mubr.msk.f32.vlgmr.msra.gmra.mrb[18].mxu0 %vm178_vm2, %v2676_v60  ;;  %v1989_v62 = vmul.f32 %v2872_v52, %v1977_v61  ;;  %2627 = vmatprep.subr.bf16.mxu1 %v2687_v0 }
 0x571   :  { %2623 = vmatpush3.bf16.msra.mxu0 %v2795_v28  ;;  %2465 = vmatprep.mubr.msk.f32.mxu0 %vm2688_vm1, %v2689_v4 }
 0x572   :  { %v2005_v63 = vsel %vm19_vm0, %v1989_v62, 0.0  ;;  %2624 = vmatprep.subr.bf16.mxu0 %v2687_v0 }
 0x573   :  { %2006 = vadd.xlane.f32.xlu0 %v2005_v63 }
 0x575   :  { %2626 = vmatpush3.bf16.msra.mxu0 %v2805_v31 }
 0x576   :  { %2633 = vmatprep.subr.bf16.mxu0 %v2687_v0 }
 0x600   :  { %v2007_v48 = vpop.xlane.xlu0 %2006 }
 0x63b   :  { %v1442_v1 = vpop.f32.mrb[16].mxu0 }
 0x63c   :  { %v1515_v2 = vpop.f32.mrb[16].mxu1  ;;  %v2423_v3 = vpop.f32.mrb[17].mxu0 }
 0x63d   :  { %v1516_v6 = vadd.f32 %v1515_v2, %v1442_v1  ;;  %v2434_v7 = vpop.f32.mrb[17].mxu1 }
 0x63f   :  { %v1519_v8 = vadd.f32 %v2852_v42, %v1516_v6 }
 0x641   :  { %2677 = vtanh.f32 %v1519_v8 }
 0x643   :  { %v1591_v11 = vpop.f32.mrb[18].mxu0 }
 0x644   :  { %v1595_v12 = vadd.f32 %v1591_v11, %v1524_v9  ;;  %v2445_v13 = vpop.f32.mrb[19].mxu0 }
 0x646   :  { %2679 = vtanh.f32 %v1595_v12 }
 0x64b   :  { %v2678_v14 = vpop.eup %2677 }
 0x64c   :  { %1522 = vst.msk [vmem:[#allocation5 + $0xa] sm:$0x3] %vm19_vm0, %v2678_v14  ;;  %2455 = vmatmul.mubr.msk.f32.vlgmr.msra.gmra.mrb[18].mxu1 %vm178_vm2, %v2678_v14 }
 0x64d   :  { %2629 = vmatpush3.bf16.msra.mxu1 %v2728_v5  ;;  %2476 = vmatprep.mubr.msk.f32.mxu1 %vm2688_vm1, %v2689_v4 }
 0x64e   :  { %2630 = vmatprep.subr.bf16.mxu1 %v2687_v0 }
 0x650   :  { %v2680_v15 = vpop.eup %2679 }
 0x651   :  { %2632 = vmatpush3.bf16.msra.mxu1 %v2740_v10  ;;  %2466 = vmatmul.mubr.msk.f32.vlgmr.msra.gmra.mrb[20].mxu0 %vm178_vm2, %v2680_v15 }
 0x652   :  { %2639 = vmatprep.subr.bf16.mxu1 %v2687_v0  ;;  %2635 = vmatpush3.bf16.msra.mxu0 %v2775_v21 }
 0x653   :  { %v1978_v16 = vld [vmem:[#allocation5 + $0xa] sm:$0x3]  ;;  %2636 = vmatprep.subr.bf16.mxu0 %v2687_v0  ;;  %2487 = vmatprep.mubr.msk.f32.mxu0 %vm2688_vm1, %v2689_v4 }
 0x654   :  { %2477 = vmatmul.mubr.msk.f32.vlgmr.msra.gmra.mrb[20].mxu1 %vm178_vm2, %v2680_v15  ;;  %v1990_v5 = vmul.f32 %v2872_v52, %v1978_v16 }
 0x655   :  { %2641 = vmatpush3.bf16.msra.mxu1 %v2795_v28  ;;  %2498 = vmatprep.mubr.msk.f32.mxu1 %vm2688_vm1, %v2689_v4  ;;  %v1748_v28 = vld [vmem:[#allocation4 + $0xe] sm:$0x3] }
 0x656   :  { %v2008_v10 = vsel %vm19_vm0, %v1990_v5, 0.0  ;;  %2642 = vmatprep.subr.bf16.mxu1 %v2687_v0  ;;  %2638 = vmatpush3.bf16.msra.mxu0 %v2785_v24 }
 0x657   :  { %2009 = vadd.xlane.f32.xlu1 %v2008_v10 }
 0x659   :  { %2644 = vmatpush3.bf16.msra.mxu1 %v2805_v31 }
 0x6e4   :  { %v2010_v51 = vpop.xlane.xlu1 %2009 }
 0x71f   :  { %v1666_v21 = vpop.f32.mrb[18].mxu1 }
 0x720   :  { %v2456_v17 = vpop.f32.mrb[19].mxu1 }
 0x724   :  { %v1739_v18 = vpop.f32.mrb[20].mxu0 }
 0x725   :  { %v1740_v19 = vadd.f32 %v1739_v18, %v1666_v21  ;;  %v2467_v20 = vpop.f32.mrb[21].mxu0 }
 0x727   :  { %v1743_v22 = vadd.f32 %v2852_v42, %v1740_v19  ;;  %v1815_v23 = vpop.f32.mrb[20].mxu1 }
 0x728   :  { %v1819_v25 = vadd.f32 %v1815_v23, %v1748_v28  ;;  %v2478_v4 = vpop.f32.mrb[21].mxu1 }
 0x729   :  { %2681 = vtanh.f32 %v1743_v22 }
 0x72a   :  { %2683 = vtanh.f32 %v1819_v25 }
 0x733   :  { %v2682_v26 = vpop.eup %2681 }
 0x734   :  { %v2684_v0 = vpop.eup %2683  ;;  %1746 = vst.msk [vmem:[#allocation5 + $0xc] sm:$0x3] %vm19_vm0, %v2682_v26  ;;  %2488 = vmatmul.mubr.msk.f32.vlgmr.msra.gmra.mrb[22].mxu0 %vm178_vm2, %v2682_v26 }
 0x735   :  { %1971 = vst.msk [vmem:[#allocation2] sm:$0x3] %vm19_vm0, %v2684_v0  ;;  %2499 = vmatmul.mubr.msk.f32.vlgmr.msra.gmra.mrb[22].mxu1 %vm178_vm2, %v2684_v0 }
 0x73b   :  { %v1979_v24 = vld [vmem:[#allocation5 + $0xc] sm:$0x3] }
 0x73c   :  { %v1991_v31 = vmul.f32 %v2872_v52, %v1979_v24 }
 0x73e   :  { %v2011_v27 = vsel %vm19_vm0, %v1991_v31, 0.0 }
 0x73f   :  { %2012 = vadd.xlane.f32.xlu0 %v2011_v27 }
 0x7cc   :  { %v2013_v55 = vpop.xlane.xlu0 %2012 }
 0x807   :  { %v1890_v29 = vpop.f32.mrb[22].mxu0 }
 0x808   :  { %v1963_v30 = vpop.f32.mrb[22].mxu1  ;;  %v2489_v34 = vpop.f32.mrb[23].mxu0 }
 0x809   :  { %v1964_v35 = vadd.f32 %v1963_v30, %v1890_v29  ;;  %v2500_v37 = vpop.f32.mrb[23].mxu1 }
 0x80b   :  { %v1967_v38 = vadd.f32 %v2852_v42, %v1964_v35  ;;  %v2018_v42 = vstv %s3029_s2 }
 0x80c   :  { %v2020_v49 = vadd.f32 %v2018_v42, %v1998_v43  ;;  %v2021_v50 = vadd.f32 %v2018_v42, %v2001_v45  ;;  %v2022_v54 = vadd.f32 %v2018_v42, %v2004_v46  ;;  %v2023_v56 = vadd.f32 %v2018_v42, %v2007_v48 }
 0x80d   :  { %2685 = vtanh.f32 %v1967_v38  ;;  %v2024_v58 = vadd.f32 %v2018_v42, %v2010_v51  ;;  %v2025_v60 = vadd.f32 %v2018_v42, %v2013_v55 }
 0x80e   :  { %v2044_v57 = vrot.slane %v2020_v49, %v2039_v53  ;;  %v2048_v59 = vrot.slane %v2021_v50, %v2039_v53  ;;  %v2052_v61 = vrot.slane %v2022_v54, %v2039_v53  ;;  %v2056_v62 = vrot.slane %v2023_v56, %v2039_v53 }
 0x80f   :  { %v2060_v1 = vrot.slane %v2024_v58, %v2039_v53  ;;  %v2064_v33 = vrot.slane %v2025_v60, %v2039_v53 }
 0x817   :  { %v2686_v39 = vpop.eup %2685 }
 0x818   :  { %1970 = vst.msk [vmem:[#allocation5 + $0xe] sm:$0x3] %vm19_vm0, %v2686_v39  ;;  %1972 = vst.msk [vmem:[#allocation3] sm:$0x3] %vm19_vm0, %v2686_v39 }
 0x81f   :  { %v1980_v36 = vld [vmem:[#allocation5 + $0xe] sm:$0x3] }
 0x820   :  { %v1992_v40 = vmul.f32 %v2872_v52, %v1980_v36  ;;  %v2019_v52 = vadd.f32 %v2018_v42, %v1995_v44 }
 0x822   :  { %v2014_v41 = vsel %vm19_vm0, %v1992_v40, 0.0  ;;  %v2040_v32 = vrot.slane %v2019_v52, %v2039_v53 }
 0x823   :  { %2015 = vadd.xlane.f32.xlu1 %v2014_v41 }
 0x824   :  { %v2070_v63 = vsel %vm2069_vm3, %v2044_v57, %v2040_v32 }
 0x825   :  { %v2072_v2 = vsel %vm2071_vm4, %v2048_v59, %v2070_v63 }
 0x826   :  { %v2074_v6 = vsel %vm2073_vm5, %v2052_v61, %v2072_v2 }
 0x827   :  { %v2076_v8 = vsel %vm2075_vm6, %v2056_v62, %v2074_v6 }
 0x828   :  { %v2078_v9 = vsel %vm2077_vm7, %v2060_v1, %v2076_v8 }
 0x829   :  { %v2080_v12 = vsel %vm2079_vm8, %v2064_v33, %v2078_v9 }
 0x8b0   :  { %v2016_v3 = vpop.xlane.xlu1 %2015 }
 0x8b1   :  { %v2026_v7 = vadd.f32 %v2018_v42, %v2016_v3 }
 0x8b3   :  { %v2068_v11 = vrot.slane %v2026_v7, %v2039_v53 }
 0x8b5   :  { %v2082_v13 = vsel %vm2081_vm9, %v2068_v11, %v2080_v12 }
 0x8b6   :  { %2085 = vst.msk [vmem:[%s3030_s3] sm:$0xff] %vm2084_vm10, %v2082_v13 }

</bundles_post_ra>
